<compile_context>
chip_gen: v5e
topology: v5e:2x2
jax: 0.10.0
libtpu: 0.0.40
codegen_flags: <defaults>
</compile_context>

<pallas_src>
import functools

import jax
import jax.numpy as jnp
from jax.experimental import pallas as pl
from jax.experimental.pallas import tpu as pltpu


def _problem1_loss_kernel(x_ref, w1_ref, b1_ref, w2_ref, b2_ref, ic_ref,
                          out_ref, *, n_valid, tile_n):
    # Lane-dense layout: points on lanes, hidden units on sublanes.
    x = x_ref[...]                       # (1, tile_n)
    w1 = w1_ref[...]                     # (H, 1)
    b1 = b1_ref[...]                     # (H, 1)
    w2 = w2_ref[...]                     # (H, 1)
    b2 = b2_ref[0, 0]                    # scalar from SMEM
    ic = ic_ref[0, 0]                    # scalar from SMEM

    # ANN forward: N(x) = sum_h w2[h] * sigmoid(w1[h]*x + b1[h]) + b2
    z = w1 * x + b1                      # (H, tile_n)
    # sigmoid(z) == 0.5*(tanh(z/2)+1): single EUP transcendental per element.
    h = 0.5 * (jnp.tanh(0.5 * z) + 1.0)  # (H, tile_n)
    hw = h * w2                          # (H, tile_n)
    n = jnp.sum(hw, axis=0, keepdims=True) + b2          # (1, tile_n)

    # Analytic dN/dx (replaces torch `ann(x).backward(ones_like(x))`):
    #   dN/dx = sum_h w2[h] * h*(1-h) * w1[h]
    dn = jnp.sum(hw * (1.0 - h) * w1, axis=0, keepdims=True)   # (1, tile_n)

    # trial(x) = ic + x*N(x);  d trial/dx = N(x) + x*dN/dx
    trial = ic + x * n                   # (1, tile_n)
    dtrial = n + x * dn                  # (1, tile_n)

    # p(x), f(x): hoist x^2/x^3, one divide for the shared rational term.
    x2 = x * x
    x3 = x2 * x
    rat = (1.0 + 3.0 * x2) / (1.0 + x + x3)
    p = x + rat
    f = x3 + 2.0 * x + x2 * rat

    err = dtrial - (f - p * trial)
    sq = err * err                       # (1, tile_n)

    # Mask padded lanes out of the reduction (static skip when no padding).
    if n_valid is not None:
        lane = jax.lax.broadcasted_iota(jnp.int32, (1, tile_n), 1)
        idx = pl.program_id(0) * tile_n + lane
        sq = jnp.where(idx < n_valid, sq, 0.0)

    # Resident (1,1) accumulator block across the grid.
    @pl.when(pl.program_id(0) == 0)
    def _():
        out_ref[...] = jnp.zeros_like(out_ref)

    out_ref[...] += jnp.sum(sq, keepdims=True)


def problem1_loss(x, w1, b1, w2, b2, ic, *, tile_n=512):
    """Lagaris problem-1 collocation loss.

    x: (N,) or (N,1) f32 collocation points; w1,b1,w2: hidden params (H,)-like;
    b2, ic: single-element arrays. Returns the scalar loss.
    """
    assert tile_n % 128 == 0, "tile_n must be a multiple of 128 (lane width)"

    x = jnp.asarray(x, jnp.float32).reshape(1, -1)      # points on lanes
    w1 = jnp.asarray(w1, jnp.float32).reshape(-1, 1)    # hidden on sublanes
    b1 = jnp.asarray(b1, jnp.float32).reshape(-1, 1)
    w2 = jnp.asarray(w2, jnp.float32).reshape(-1, 1)
    b2 = jnp.asarray(b2, jnp.float32).reshape(1, 1)
    ic = jnp.asarray(ic, jnp.float32).reshape(1, 1)

    n = x.shape[1]
    h = w1.shape[0]
    num_tiles = pl.cdiv(n, tile_n)
    n_pad = num_tiles * tile_n
    if n_pad != n:
        x = jnp.pad(x, ((0, 0), (0, n_pad - n)))        # padded lanes masked in-kernel

    vmem = pltpu.MemorySpace.VMEM
    smem = pltpu.MemorySpace.SMEM

    kernel = functools.partial(
        _problem1_loss_kernel,
        n_valid=(n if n_pad != n else None),
        tile_n=tile_n,
    )

    out = pl.pallas_call(
        kernel,
        out_shape=jax.ShapeDtypeStruct((1, 1), jnp.float32),
        grid=(num_tiles,),
        in_specs=[
            pl.BlockSpec((1, tile_n), lambda i: (0, i), memory_space=vmem),  # x tile
            pl.BlockSpec((h, 1), lambda i: (0, 0), memory_space=vmem),       # w1 (resident)
            pl.BlockSpec((h, 1), lambda i: (0, 0), memory_space=vmem),       # b1 (resident)
            pl.BlockSpec((h, 1), lambda i: (0, 0), memory_space=vmem),       # w2 (resident)
            pl.BlockSpec((1, 1), lambda i: (0, 0), memory_space=smem),       # b2 scalar
            pl.BlockSpec((1, 1), lambda i: (0, 0), memory_space=smem),       # ic scalar
        ],
        out_specs=pl.BlockSpec((1, 1), lambda i: (0, 0), memory_space=vmem),
        compiler_params=pltpu.CompilerParams(
            dimension_semantics=("arbitrary",),   # accumulator resident across grid
        ),
    )(x, w1, b1, w2, b2, ic)

    return out[0, 0]


if __name__ == "__main__":
    # Small but grid-exercising sizes: 300 points (-> 3 tiles of 128 + masking),
    # 32 hidden units.
    N, H = 300, 32

    key = jax.random.PRNGKey(0)
    kx, k1, k2, k3, k4 = jax.random.split(key, 5)
    x = jax.random.uniform(kx, (N,), jnp.float32, 0.0, 2.0)    # points in [0, 2]
    w1 = jax.random.normal(k1, (H,), jnp.float32)
    b1 = jax.random.normal(k2, (H,), jnp.float32)
    w2 = jax.random.normal(k3, (H,), jnp.float32) / jnp.sqrt(H)
    b2 = jax.random.normal(k4, (1, 1), jnp.float32)
    ic = jnp.ones((1, 1), jnp.float32)                         # psi(0) = 1

    loss = jax.block_until_ready(problem1_loss(x, w1, b1, w2, b2, ic, tile_n=128))

    # Pure-JAX reference mirroring the PyTorch autograd path.
    def ann(xs):  # scalar -> scalar
        hh = jax.nn.sigmoid(xs * w1 + b1)
        return jnp.sum(hh * w2) + b2[0, 0]

    n_ref = jax.vmap(ann)(x)
    dn_ref = jax.vmap(jax.grad(ann))(x)
    trial = ic[0, 0] + x * n_ref
    dtrial = n_ref + x * dn_ref
    rat = (1.0 + 3.0 * x ** 2) / (1.0 + x + x ** 3)
    p = x + rat
    f = x ** 3 + 2.0 * x + x ** 2 * rat
    ref = jnp.sum((dtrial - (f - p * trial)) ** 2)

    assert jnp.allclose(loss, ref, rtol=2e-4, atol=1e-3), (float(loss), float(ref))
    print("KERNEL_OK")
</pallas_src>

<mosaic_0001>
module attributes {stable_mosaic.version = 11 : i64} {
  func.func @_problem1_loss_kernel(%arg0: i32, %arg1: memref<1x128xf32, #tpu.memory_space<vmem>>, %arg2: memref<32x1xf32, #tpu.memory_space<vmem>>, %arg3: memref<32x1xf32, #tpu.memory_space<vmem>>, %arg4: memref<32x1xf32, #tpu.memory_space<vmem>>, %arg5: memref<1x1xf32, #tpu.memory_space<smem>>, %arg6: memref<1x1xf32, #tpu.memory_space<smem>>, %arg7: memref<1x1xf32, #tpu.memory_space<vmem>>) attributes {dimension_semantics = [#tpu.dimension_semantics<arbitrary>], iteration_bounds = array<i64: 3>, scalar_prefetch = 0 : i64, scratch_operands = 0 : i64, tpu.core_type = #tpu.core_type<tc>, window_params = [{transform_indices = @transform_0, window_bounds = array<i64: 1, 128>}, {pipeline_mode = #tpu.pipeline_mode<synchronous>, transform_indices = @transform_1, window_bounds = array<i64: 32, 1>}, {pipeline_mode = #tpu.pipeline_mode<synchronous>, transform_indices = @transform_2, window_bounds = array<i64: 32, 1>}, {pipeline_mode = #tpu.pipeline_mode<synchronous>, transform_indices = @transform_3, window_bounds = array<i64: 32, 1>}, {transform_indices = @transform_4, window_bounds = array<i64: 1, 1>}, {transform_indices = @transform_5, window_bounds = array<i64: 1, 1>}, {pipeline_mode = #tpu.pipeline_mode<synchronous>, transform_indices = @transform_6, window_bounds = array<i64: 1, 1>}]} {
    %c0 = arith.constant 0 : index
    %c0_0 = arith.constant 0 : index
    %0 = vector.load %arg1[%c0, %c0_0] : memref<1x128xf32, #tpu.memory_space<vmem>>, vector<1x128xf32>
    %c0_1 = arith.constant 0 : index
    %c0_2 = arith.constant 0 : index
    %1 = vector.load %arg2[%c0_1, %c0_2] : memref<32x1xf32, #tpu.memory_space<vmem>>, vector<32x1xf32>
    %c0_3 = arith.constant 0 : index
    %c0_4 = arith.constant 0 : index
    %2 = vector.load %arg3[%c0_3, %c0_4] : memref<32x1xf32, #tpu.memory_space<vmem>>, vector<32x1xf32>
    %c0_5 = arith.constant 0 : index
    %c0_6 = arith.constant 0 : index
    %3 = vector.load %arg4[%c0_5, %c0_6] : memref<32x1xf32, #tpu.memory_space<vmem>>, vector<32x1xf32>
    %c0_7 = arith.constant 0 : index
    %c0_8 = arith.constant 0 : index
    %4 = memref.load %arg5[%c0_7, %c0_8] : memref<1x1xf32, #tpu.memory_space<smem>>
    %c0_9 = arith.constant 0 : index
    %c0_10 = arith.constant 0 : index
    %5 = memref.load %arg6[%c0_9, %c0_10] : memref<1x1xf32, #tpu.memory_space<smem>>
    %6 = vector.broadcast %1 : vector<32x1xf32> to vector<32x128xf32>
    %7 = vector.broadcast %0 : vector<1x128xf32> to vector<32x128xf32>
    %8 = arith.mulf %6, %7 : vector<32x128xf32>
    %9 = vector.broadcast %2 : vector<32x1xf32> to vector<32x128xf32>
    %10 = arith.addf %8, %9 : vector<32x128xf32>
    %cst = arith.constant 5.000000e-01 : f32
    %11 = vector.broadcast %cst : f32 to vector<32x128xf32>
    %12 = arith.mulf %11, %10 : vector<32x128xf32>
    %13 = math.tanh %12 : vector<32x128xf32>
    %cst_11 = arith.constant 1.000000e+00 : f32
    %14 = vector.broadcast %cst_11 : f32 to vector<32x128xf32>
    %15 = arith.addf %13, %14 : vector<32x128xf32>
    %cst_12 = arith.constant 5.000000e-01 : f32
    %16 = vector.broadcast %cst_12 : f32 to vector<32x128xf32>
    %17 = arith.mulf %16, %15 : vector<32x128xf32>
    %18 = vector.broadcast %3 : vector<32x1xf32> to vector<32x128xf32>
    %19 = arith.mulf %17, %18 : vector<32x128xf32>
    %cst_13 = arith.constant dense<0.000000e+00> : vector<128xf32>
    %20 = vector.multi_reduction <add>, %19, %cst_13 [0] : vector<32x128xf32> to vector<128xf32>
    %21 = vector.shape_cast %20 : vector<128xf32> to vector<1x128xf32>
    %22 = vector.broadcast %4 : f32 to vector<1x128xf32>
    %23 = arith.addf %21, %22 : vector<1x128xf32>
    %cst_14 = arith.constant 1.000000e+00 : f32
    %24 = vector.broadcast %cst_14 : f32 to vector<32x128xf32>
    %25 = arith.subf %24, %17 : vector<32x128xf32>
    %26 = arith.mulf %19, %25 : vector<32x128xf32>
    %27 = vector.broadcast %1 : vector<32x1xf32> to vector<32x128xf32>
    %28 = arith.mulf %26, %27 : vector<32x128xf32>
    %cst_15 = arith.constant dense<0.000000e+00> : vector<128xf32>
    %29 = vector.multi_reduction <add>, %28, %cst_15 [0] : vector<32x128xf32> to vector<128xf32>
    %30 = vector.shape_cast %29 : vector<128xf32> to vector<1x128xf32>
    %31 = arith.mulf %0, %23 : vector<1x128xf32>
    %32 = vector.broadcast %5 : f32 to vector<1x128xf32>
    %33 = arith.addf %32, %31 : vector<1x128xf32>
    %34 = arith.mulf %0, %30 : vector<1x128xf32>
    %35 = arith.addf %23, %34 : vector<1x128xf32>
    %36 = arith.mulf %0, %0 : vector<1x128xf32>
    %37 = arith.mulf %36, %0 : vector<1x128xf32>
    %cst_16 = arith.constant 3.000000e+00 : f32
    %38 = vector.broadcast %cst_16 : f32 to vector<1x128xf32>
    %39 = arith.mulf %38, %36 : vector<1x128xf32>
    %cst_17 = arith.constant 1.000000e+00 : f32
    %40 = vector.broadcast %cst_17 : f32 to vector<1x128xf32>
    %41 = arith.addf %40, %39 : vector<1x128xf32>
    %cst_18 = arith.constant 1.000000e+00 : f32
    %42 = vector.broadcast %cst_18 : f32 to vector<1x128xf32>
    %43 = arith.addf %42, %0 : vector<1x128xf32>
    %44 = arith.addf %43, %37 : vector<1x128xf32>
    %45 = arith.divf %41, %44 : vector<1x128xf32>
    %46 = arith.addf %0, %45 : vector<1x128xf32>
    %cst_19 = arith.constant 2.000000e+00 : f32
    %47 = vector.broadcast %cst_19 : f32 to vector<1x128xf32>
    %48 = arith.mulf %47, %0 : vector<1x128xf32>
    %49 = arith.addf %37, %48 : vector<1x128xf32>
    %50 = arith.mulf %36, %45 : vector<1x128xf32>
    %51 = arith.addf %49, %50 : vector<1x128xf32>
    %52 = arith.mulf %46, %33 : vector<1x128xf32>
    %53 = arith.subf %51, %52 : vector<1x128xf32>
    %54 = arith.subf %35, %53 : vector<1x128xf32>
    %55 = arith.mulf %54, %54 : vector<1x128xf32>
    %56 = tpu.iota {dimensions = array<i32: 1>} : vector<1x128xi32>
    %c128_i32 = arith.constant 128 : i32
    %57 = arith.muli %arg0, %c128_i32 : i32
    %58 = vector.broadcast %57 : i32 to vector<1x128xi32>
    %59 = arith.addi %58, %56 : vector<1x128xi32>
    %c300_i32 = arith.constant 300 : i32
    %60 = vector.broadcast %c300_i32 : i32 to vector<1x128xi32>
    %61 = arith.cmpi slt, %59, %60 : vector<1x128xi32>
    %cst_20 = arith.constant 0.000000e+00 : f32
    %62 = vector.broadcast %cst_20 : f32 to vector<1x128xf32>
    %63 = arith.select %61, %55, %62 : vector<1x128xi1>, vector<1x128xf32>
    %c0_i32 = arith.constant 0 : i32
    %64 = arith.cmpi eq, %arg0, %c0_i32 : i32
    %65 = arith.extui %64 : i1 to i32
    %c0_i32_21 = arith.constant 0 : i32
    %66 = arith.cmpi ne, %65, %c0_i32_21 : i32
    scf.if %66 {
      %cst_27 = arith.constant 0.000000e+00 : f32
      %75 = vector.broadcast %cst_27 : f32 to vector<1x1xf32>
      %c0_28 = arith.constant 0 : index
      %c0_29 = arith.constant 0 : index
      %76 = vector.load %arg7[%c0_28, %c0_29] : memref<1x1xf32, #tpu.memory_space<vmem>>, vector<1x1xf32>
      tpu.vector_store %arg7[%c0_28, %c0_29], %75 {strides = array<i32>} : memref<1x1xf32, #tpu.memory_space<vmem>>, vector<1x1xf32>,
    } else {
    }
    %c0_22 = arith.constant 0 : index
    %c0_23 = arith.constant 0 : index
    %67 = vector.load %arg7[%c0_22, %c0_23] : memref<1x1xf32, #tpu.memory_space<vmem>>, vector<1x1xf32>
    %68 = vector.shape_cast %63 : vector<1x128xf32> to vector<1x1x128xf32>
    %cst_24 = arith.constant dense<0.000000e+00> : vector<1xf32>
    %69 = vector.multi_reduction <add>, %68, %cst_24 [1, 2] : vector<1x1x128xf32> to vector<1xf32>
    %70 = vector.shape_cast %69 : vector<1xf32> to vector<1x1x1xf32>
    %71 = vector.extract %70[0, 0, 0] : f32 from vector<1x1x1xf32>
    %72 = vector.broadcast %71 : f32 to vector<1x1xf32>
    %73 = arith.addf %67, %72 : vector<1x1xf32>
    %c0_25 = arith.constant 0 : index
    %c0_26 = arith.constant 0 : index
    %74 = vector.load %arg7[%c0_25, %c0_26] : memref<1x1xf32, #tpu.memory_space<vmem>>, vector<1x1xf32>
    tpu.vector_store %arg7[%c0_25, %c0_26], %73 {strides = array<i32>} : memref<1x1xf32, #tpu.memory_space<vmem>>, vector<1x1xf32>,
    return
  }
  func.func @transform_0(%arg0: i32) -> (i32, i32) {
    %c0_i32 = arith.constant 0 : i32
    %c0_i32_0 = arith.constant 0 : i32
    return %c0_i32, %arg0 : i32, i32
  }
  func.func @transform_1(%arg0: i32) -> (i32, i32) {
    %c0_i32 = arith.constant 0 : i32
    %c0_i32_0 = arith.constant 0 : i32
    %c0_i32_1 = arith.constant 0 : i32
    return %c0_i32, %c0_i32_0 : i32, i32
  }
  func.func @transform_2(%arg0: i32) -> (i32, i32) {
    %c0_i32 = arith.constant 0 : i32
    %c0_i32_0 = arith.constant 0 : i32
    %c0_i32_1 = arith.constant 0 : i32
    return %c0_i32, %c0_i32_0 : i32, i32
  }
  func.func @transform_3(%arg0: i32) -> (i32, i32) {
    %c0_i32 = arith.constant 0 : i32
    %c0_i32_0 = arith.constant 0 : i32
    %c0_i32_1 = arith.constant 0 : i32
    return %c0_i32, %c0_i32_0 : i32, i32
  }
  func.func @transform_4(%arg0: i32) -> (i32, i32) {
    %c0_i32 = arith.constant 0 : i32
    %c0_i32_0 = arith.constant 0 : i32
    %c0_i32_1 = arith.constant 0 : i32
    return %c0_i32, %c0_i32_0 : i32, i32
  }
  func.func @transform_5(%arg0: i32) -> (i32, i32) {
    %c0_i32 = arith.constant 0 : i32
    %c0_i32_0 = arith.constant 0 : i32
    %c0_i32_1 = arith.constant 0 : i32
    return %c0_i32, %c0_i32_0 : i32, i32
  }
  func.func @transform_6(%arg0: i32) -> (i32, i32) {
    %c0_i32 = arith.constant 0 : i32
    %c0_i32_0 = arith.constant 0 : i32
    %c0_i32_1 = arith.constant 0 : i32
    return %c0_i32, %c0_i32_0 : i32, i32
  }
}

</mosaic_0001>

<bundles_post_ra>
// kernel: tpu_custom_call.1
= control target key start
LH: loop header
LB: loop body
LE: loop exit
PB: predicated region body
PF: predicated region fallthrough
CT: control target
= control target key end

     0   :  { %s708_s0 = inlined_call_operand.vmem [shape: f32[1,384], index: 0, kind: input, shape index: {}]   ;;  %s709_s1 = inlined_call_operand.vmem [shape: f32[32,1], index: 1, kind: input, shape index: {}]   ;;  %s710_s2 = inlined_call_operand.vmem [shape: f32[32,1], index: 2, kind: input, shape index: {}]   ;;  %s711_s3 = inlined_call_operand.vmem [shape: f32[32,1], index: 3, kind: input, shape index: {}]   ;;  %s712_s4 = inlined_call_operand.<no memory space> [shape: f32[1,1], index: 4, kind: input, shape index: {}]   ;;  %s713_s5 = inlined_call_operand.<no memory space> [shape: f32[1,1], index: 5, kind: input, shape index: {}]   ;;  %s714_s6 = inlined_call_operand.hbm [shape: f32[1,1], index: 6, kind: output, shape index: {}]  }
   0x1   :  { %11 = sst [smem:[#allocation2]] %s712_s4 }
   0x2   :  { %12 = sst [smem:[#allocation3]] %s713_s5 }
   0x3   :  { %13 = vsyncpa [#allocation5], 0  ;;  %s608_s25 = smov 0  }
   0x4 LB: > { %s614_s26 = sadd.s32 4294967295, %s562_s25   ;;  %p484_p0 = scmp.ge.s32.totalorder %s562_s25, 1  ;;  %s562_s25 = sphi %s608_s25, %s19_s25  }
   0x5   : > { %p208_p1 = scmp.lt.s32.totalorder %s562_s25, 4 }
   0x7   : > { %p209_p2 = pnand %p484_p0, %p208_p1 }
   0x8   : > { %p231_p3 = scmp.lt.s32.totalorder (!%p209_p2), %s614_s26, 2  ;;  %s247_s29 = sld [smem:[#allocation2]] (!%p209_p2) }
   0x9   : > { %212 = sbr.rel (%p209_p2) target bundleno = 385 (0x181), region = 44  ;;  %s248_s30 = sld [smem:[#allocation3]] (!%p209_p2) }
   0xa   : > { %s485_s7 = sshll.u32 (!%p209_p2), %s614_s26, 7  ;;  %p486_p4 = scmp.ne.s32.totalorder (!%p209_p2), %s614_s26, 0 }
   0xe   : > { %v237_v0 = vld [vmem:[%s709_s1 + $0x10] sm:$0xff]  ;;  %v235_v1 = vld [vmem:[%s709_s1] sm:$0xff]  ;;  %v564_v2 = vmov 0   ;;  %v240_v3 = vld [vmem:[%s710_s2 + $0x8] sm:$0xff]  ;;  %s232_s4 = scalar_select %p231_p3, %s614_s26, 2 }
   0xf   : > { %511 = vset.pattern.permute.xlu1 %v564_v2  ;;  %510 = vset.pattern.permute.xlu0 %v564_v2  ;;  %v239_v4 = vld [vmem:[%s710_s2] sm:$0xff]  ;;  %v236_v5 = vld [vmem:[%s709_s1 + $0x8] sm:$0xff]  ;;  %v238_v6 = vld [vmem:[%s709_s1 + $0x18] sm:$0xff] }
  0x10   : > { %261 = vperm.xlu1 %511, %v237_v0   ;;  %251 = vperm.xlu0 %510, %v235_v1   ;;  %v242_v7 = vld [vmem:[%s710_s2 + $0x18] sm:$0xff]  ;;  %v241_v8 = vld [vmem:[%s710_s2 + $0x10] sm:$0xff]  ;;  %v243_v9 = vld [vmem:[%s711_s3] sm:$0xff]  ;;  %s233_s28 = scalar_lea.vmem %s708_s0, %s232_s4 }
  0x11   : > { %512 = vset.pattern.permute.xlu2 %v564_v2  ;;  %v245_v10 = vld [vmem:[%s711_s3 + $0x10] sm:$0xff]  ;;  %v244_v11 = vld [vmem:[%s711_s3 + $0x8] sm:$0xff]  ;;  %v246_v12 = vld [vmem:[%s711_s3 + $0x18] sm:$0xff] }
  0x12   : > { %283 = vperm.xlu2 %512, %v240_v3   ;;  %v659_v13 = vld [vmem:[%s233_s28] sm:$0x1] }
  0x13   : > { %v667_v17 = vmul.f32 %v659_v13, %v659_v13  ;;  %v513_v18 = vld [vmem:[%s233_s28] ss:$0 sm:$0xff]  ;;  %v381_v20 = vadd.f32 1.0, %v659_v13 }
  0x15   : > { %v671_v19 = vmul.f32 %v667_v17, %v659_v13 }
  0x17   : > { %v676_v26 = vadd.f32 %v381_v20, %v671_v19 }
  0x18   : > { %278 = vperm.xlu1 %511, %v239_v4   ;;  %256 = vperm.xlu0 %510, %v236_v5  }
  0x19   : > { %vm388_vm0 = vweird.f32 %v676_v26 }
  0x1a   : > { %266 = vperm.xlu2 %512, %v238_v6  }
  0x20   : > { %293 = vperm.xlu1 %511, %v242_v7   ;;  %288 = vperm.xlu0 %510, %v241_v8  }
  0x22   : > { %318 = vperm.xlu2 %512, %v243_v9  }
  0x28   : > { %328 = vperm.xlu1 %511, %v245_v10   ;;  %323 = vperm.xlu0 %510, %v244_v11  }
  0x2a   : > { %333 = vperm.xlu2 %512, %v246_v12   ;;  %v394_v12 = vand.u32 2147483648, %v676_v26 }
  0x6c   : > { %v284_v16 = vpop.permute.xlu2 %283 }
  0x74   : > { %v267_v27 = vpop.permute.xlu2 %266 }
  0x75   : > { %v275_v31 = vmul.f32 %v513_v18, %v267_v27 }
  0x7c   : > { %v319_v43 = vpop.permute.xlu2 %318 }
  0x82   : > { %v661_v14 = vpop.permute.xlu1 %261  ;;  %v663_v15 = vpop.permute.xlu0 %251 }
  0x83   : > { %v272_v21 = vmul.f32 %v513_v18, %v663_v15  ;;  %v274_v32 = vmul.f32 %v513_v18, %v661_v14 }
  0x84   : > { %v334_v60 = vpop.permute.xlu2 %333 }
  0x8a   : > { %v279_v22 = vpop.permute.xlu1 %278  ;;  %v257_v23 = vpop.permute.xlu0 %256 }
  0x8b   : > { %v296_v24 = vadd.f32 %v279_v22, %v272_v21  ;;  %v273_v25 = vmul.f32 %v513_v18, %v257_v23  ;;  %v392_v21 = vand.u32 2147483647, %v676_v26 }
  0x8d   : > { %v300_v28 = vmul.f32 0.5, %v296_v24  ;;  %v297_v29 = vadd.f32 %v284_v16, %v273_v25  ;;  %vm393_vm3 = vcmp.eq.f32.partialorder %v392_v21, 8.507059e+37 }
  0x8f   : > { %514 = vtanh.f32 %v300_v28  ;;  %v301_v30 = vmul.f32 0.5, %v297_v29  ;;  %v379_v28 = vmul.f32 3.0, %v667_v17 }
  0x90   : > { %516 = vrcp.f32 %v676_v26 }
  0x91   : > { %518 = vtanh.f32 %v301_v30 }
  0x92   : > { %v294_v33 = vpop.permute.xlu1 %293  ;;  %v289_v34 = vpop.permute.xlu0 %288 }
  0x93   : > { %v299_v35 = vadd.f32 %v294_v33, %v275_v31  ;;  %v298_v36 = vadd.f32 %v289_v34, %v274_v32 }
  0x95   : > { %v515_v37 = vpop.eup %514  ;;  %v303_v38 = vmul.f32 0.5, %v299_v35  ;;  %v302_v39 = vmul.f32 0.5, %v298_v36 }
  0x96   : > { %v517_v40 = vpop.eup %516  ;;  %v308_v41 = vadd.f32 1.0, %v515_v37 }
  0x97   : > { %v519_v42 = vpop.eup %518  ;;  %520 = vtanh.f32 %v303_v38  ;;  %v384_v48 = vmul.f32 %v517_v40, %v676_v26  ;;  %vm389_vm1 = vweird.f32 %v517_v40  ;;  %v380_v26 = vadd.f32 1.0, %v379_v28 }
  0x98   : > { %522 = vtanh.f32 %v302_v39  ;;  %v309_v44 = vadd.f32 1.0, %v519_v42  ;;  %v312_v45 = vmul.f32 0.5, %v308_v41  ;;  %vm686_vm2 = vmor %vm388_vm0, %vm389_vm1  ;;  %v399_v38 = vmul.f32 2.0, %v659_v13 }
  0x99   : > { %v385_v56 = vsub.f32 1.0, %v384_v48  ;;  %v349_v39 = vstv %s247_s29 }
  0x9a   : > { %v324_v46 = vpop.permute.xlu0 %323  ;;  %v313_v47 = vmul.f32 0.5, %v309_v44  ;;  %v351_v52 = vsub.f32 1.0, %v312_v45  ;;  %v336_v53 = vmul.f32 %v319_v43, %v312_v45  ;;  %v329_v1 = vpop.permute.xlu1 %328  ;;  %v407_v43 = vlaneseq }
  0x9b   : > { %v386_v2 = vmul.f32 %v517_v40, %v385_v56  ;;  %v400_v45 = vadd.f32 %v399_v38, %v671_v19 }
  0x9c   : > { %v337_v49 = vmul.f32 %v324_v46, %v313_v47  ;;  %v352_v50 = vsub.f32 1.0, %v313_v47  ;;  %v355_v62 = vmul.f32 %v351_v52, %v336_v53  ;;  %v373_v47 = vstv %s248_s30 }
  0x9d   : > { %v521_v51 = vpop.eup %520  ;;  %v387_v11 = vadd.f32 %v517_v40, %v386_v2  ;;  %v410_v52 = vstv %s485_s7 }
  0x9e   : > { %v523_v54 = vpop.eup %522  ;;  %v311_v55 = vadd.f32 1.0, %v521_v51  ;;  %v356_v58 = vmul.f32 %v352_v50, %v337_v49  ;;  %v340_v5 = vadd.f32 %v337_v49, %v336_v53  ;;  %v359_v10 = vmul.f32 %v355_v62, %v663_v15 }
  0x9f   : > { %v310_v57 = vadd.f32 1.0, %v523_v54  ;;  %v395_v15 = vor.u32 1.1754944e-38, %v394_v12  ;;  %v408_v51 = vand.u32 127, %v407_v43 }
  0xa0   : > { %v315_v59 = vmul.f32 0.5, %v311_v55  ;;  %v360_v6 = vmul.f32 %v356_v58, %v257_v23 }
  0xa1   : > { %v314_v61 = vmul.f32 0.5, %v310_v57  ;;  %v411_v57 = vadd.s32 %v410_v52, %v408_v51 }
  0xa2   : > { %v339_v63 = vmul.f32 %v334_v60, %v315_v59  ;;  %v354_v0 = vsub.f32 1.0, %v315_v59  ;;  %v363_v20 = vadd.f32 %v360_v6, %v359_v10 }
  0xa3   : > { %v338_v3 = vmul.f32 %v329_v1, %v314_v61  ;;  %v353_v4 = vsub.f32 1.0, %v314_v61  ;;  %vm412_vm4 = vcmp.lt.s32.totalorder %v411_v57, 300 }
  0xa4   : > { %v358_v7 = vmul.f32 %v354_v0, %v339_v63 }
  0xa5   : > { %v357_v8 = vmul.f32 %v353_v4, %v338_v3  ;;  %v341_v9 = vadd.f32 %v340_v5, %v338_v3 }
  0xa6   : > { %v362_v23 = vmul.f32 %v358_v7, %v267_v27 }
  0xa7   : > { %v361_v16 = vmul.f32 %v357_v8, %v661_v14  ;;  %v342_v18 = vadd.f32 %v341_v9, %v339_v63  ;;  %v391_v14 = vsel %vm686_vm2, %v517_v40, %v387_v11 }
  0xa8   : > { %v396_v33 = vsel %vm393_vm3, %v395_v15, %v391_v14 }
  0xa9   : > { %v343_v24 = vrot.slane %v342_v18, 4  ;;  %v364_v25 = vadd.f32 %v363_v20, %v361_v16  ;;  %v397_v37 = vmul.f32 %v396_v33, %v380_v26 }
  0xab   : > { %v344_v29 = vadd.f32 %v343_v24, %v342_v18  ;;  %v365_v30 = vadd.f32 %v364_v25, %v362_v23  ;;  %v401_v46 = vmul.f32 %v397_v37, %v667_v17  ;;  %v398_v50 = vadd.f32 %v397_v37, %v659_v13 }
  0xad   : > { %v345_v31 = vrot.slane %v344_v29, 2  ;;  %v366_v32 = vrot.slane %v365_v30, 4  ;;  %v402_v55 = vadd.f32 %v401_v46, %v400_v45 }
  0xaf   : > { %v346_v34 = vadd.f32 %v345_v31, %v344_v29  ;;  %v367_v27 = vadd.f32 %v366_v32, %v365_v30 }
  0xb1   : > { %v347_v35 = vrot.slane %v346_v34, 1  ;;  %v368_v36 = vrot.slane %v367_v27, 2 }
  0xb3   : > { %v348_v41 = vadd.f32 %v347_v35, %v346_v34  ;;  %v369_v42 = vadd.f32 %v368_v36, %v367_v27 }
  0xb5   : > { %v350_v44 = vadd.f32 %v349_v39, %v348_v41  ;;  %v370_v40 = vrot.slane %v369_v42, 1 }
  0xb7   : > { %v371_v48 = vadd.f32 %v370_v40, %v369_v42  ;;  %v372_v49 = vmul.f32 %v350_v44, %v659_v13 }
  0xb9   : > { %v374_v53 = vadd.f32 %v373_v47, %v372_v49  ;;  %v375_v54 = vmul.f32 %v371_v48, %v659_v13 }
  0xbb   : > { %v403_v56 = vmul.f32 %v398_v50, %v374_v53  ;;  %v376_v58 = vadd.f32 %v375_v54, %v350_v44 }
  0xbd   : > { %v404_v59 = vsub.f32 %v402_v55, %v403_v56 }
  0xbf   : > { %v405_v19 = vsub.f32 %v376_v58, %v404_v59  ;;  %417 = sbr.rel (%p486_p4) target bundleno = 198 (0xc6), region = 48 }
  0xc1   : > { %v406_v17 = vmul.f32 %v405_v19, %v405_v19 }
  0xc3   : > { %v413_v60 = vsel %vm412_vm4, %v406_v17, 0.0 }
  0xc4   : > { %vm418_vm5 = vcmask 0   ;;  %v565_v61 = vmov 0.0  }
  0xc5   : > { %419 = vst.msk [vmem:[#allocation4] sm:$0x1] %vm418_vm5, %v565_v61 }
  0xc6 PF: > { %vm421_vm6 = vcmask 1040384   ;;  %s566_s8 = smov [#allocation4]   ;;  %s444_s12 = sshll.u32 %s714_s6, 4  ;;  %vm434_vm7 = vcmask 0   ;;  %s445_s12 = int_to_ptr.hbm [resolvable:$true] %s444_s12 }
  0xc7   : > { %v422_v62 = vsel %vm421_vm6, %v413_v60, 0.0  ;;  %s442_s9 = sshll.u32 %s566_s8, 4  ;;  %p497_p5 = scmp.eq.s32.totalorder %s614_s26, 2  ;;  %s443_s9 = int_to_ptr.vmem [resolvable:$true] %s442_s9 }
  0xc8   : > { %423 = vadd.xlane.f32.xlu0 %v422_v62 }
  0xcc   : > { %v420_v5 = vld [vmem:[#allocation4] sm:$0x1] }
 0x13b   : > { %v424_v13 = vpop.xlane.xlu0 %423 }
 0x13c   : > { %v425_v63 = vrot.slane %v424_v13, 4 }
 0x13e   : > { %v426_v0 = vadd.f32 %v425_v63, %v424_v13 }
 0x140   : > { %v427_v1 = vrot.slane %v426_v0, 2 }
 0x142   : > { %v428_v2 = vadd.f32 %v427_v1, %v426_v0 }
 0x144   : > { %v429_v3 = vrot.slane %v428_v2, 1 }
 0x146   : > { %v430_v4 = vadd.f32 %v429_v3, %v428_v2 }
 0x148   : > { %491 = vpush %v430_v4 }
 0x179   : > { %s492_s13 = spop %491 }
 0x17a   : > { %v432_v6 = vstv %s492_s13 }
 0x17b   : > { %v433_v7 = vadd.f32 %v432_v6, %v420_v5 }
 0x17d   : > { %435 = vst.msk [vmem:[#allocation4] sm:$0x1] %vm434_vm7, %v433_v7 }
 0x17e   : > { %494 = dma.vmem_to_hbm [thread:$0]  (%p497_p5), %s443_s9, 16, %s445_s12, [#allocation5]  }
 0x17f   : > { %557 = dma.done.wait (%p497_p5), [#allocation5], 16  }
 0x180   : > { %559 = vsyncadd (%p497_p5), [#allocation5], 4294967280 }
 0x181 PF: > { %s19_s25 = sadd.s32 1, %s562_s25  }
 0x182   : > { %p16_p6 = scmp.ge.s32.totalorder %s19_s25, 5  }
 0x184   :  { %18 = sbr.rel (!%p16_p6) target bundleno = 4 (0x4), region = 75 }
 0x189   :  { %458 = vsyncpa [#allocation5], 1 }
 0x18a   :  { %460 = vsyncpa [#allocation5 + $0x1], 1 }

</bundles_post_ra>
